<compile_context>
chip_gen: v7x
topology: tpu7x:2x2x1
jax: 0.10.0
libtpu: 0.0.40
codegen_flags: <defaults>
</compile_context>

<pallas_src>
import functools

import jax
import jax.numpy as jnp
from jax.experimental import pallas as pl
from jax.experimental.pallas import tpu as pltpu


def ffn_kernel(ln_eps,
               x_ref, w1_ref, b1_ref, w2_ref, b2_ref, gamma_ref, beta_ref,
               o_ref):
    # One (Tm, H) row tile of the flattened (B*S, H) input per grid step.
    x = x_ref[...]                                                     # (Tm, H) f32

    # Layer 1: wide MXU matmul (N = 4H) in bf16, f32 accumulate, bias+ReLU in f32.
    h = jnp.dot(x.astype(jnp.bfloat16), w1_ref[...],
                preferred_element_type=jnp.float32)
    h = jnp.maximum(h + b1_ref[...], 0.0)                              # (Tm, 4H) f32

    # Layer 2: project back to H (bf16 operands, f32 accumulate).
    o = jnp.dot(h.astype(jnp.bfloat16), w2_ref[...],
                preferred_element_type=jnp.float32)
    o = o + b2_ref[...]                                                # (Tm, H) f32
    # TODO(synk): nn.Dropout is identity at inference; training-mode dropout not implemented.

    # Residual + LayerNorm over the last dim, all in f32.
    y = x + o
    mean = jnp.mean(y, axis=-1, keepdims=True)
    cen = y - mean
    var = jnp.mean(cen * cen, axis=-1, keepdims=True)
    normed = cen * jax.lax.rsqrt(var + ln_eps)
    o_ref[...] = (normed * gamma_ref[...] + beta_ref[...]).astype(o_ref.dtype)


def ffn_forward(x, params, *, ln_eps=1e-5, tile_m=512):
    """x: (B, S, H) f32.  params: w1 (H,4H), b1 (1,4H), w2 (4H,H), b2 (1,H),
    gamma (1,H), beta (1,H).  Returns (B, S, H) f32."""
    B, S, H = x.shape
    dff = params["w1"].shape[1]

    # Fold batch*seq into the matmul M dimension (no host-side pad / slice).
    M = B * S
    x2 = x.reshape(M, H)

    # bf16 weights for the MXU; small vectors stay f32 for the VPU epilogue.
    w1 = params["w1"].astype(jnp.bfloat16)
    w2 = params["w2"].astype(jnp.bfloat16)
    b1 = params["b1"].astype(jnp.float32)
    b2 = params["b2"].astype(jnp.float32)
    gamma = params["gamma"].astype(jnp.float32)
    beta = params["beta"].astype(jnp.float32)

    # Row tile: large to amortize grid overhead, sublane(8)-aligned, capped to M.
    tm = min(tile_m, ((M + 7) // 8) * 8)
    grid = (pl.cdiv(M, tm),)

    kernel = functools.partial(ffn_kernel, ln_eps)

    row_spec = pl.BlockSpec((tm, H), lambda i: (i, 0))
    # Resident operands: constant index_map -> single-buffer them.
    resident = lambda shape: pl.BlockSpec(shape, lambda i: (0, 0),
                                          pipeline_mode=pl.Buffered(1))

    # VMEM budget: bf16 weights + f32 vectors + double-buffered x/out tiles +
    # the (tm, 4H) f32 intermediate; 2x margin, clamped to [32 MiB, 64 MiB].
    weight_bytes = (w1.size + w2.size) * 2 + (b1.size + b2.size + gamma.size + beta.size) * 4
    act_bytes = (2 * tm * H * 4) + (2 * tm * H * 4) + (tm * dff * 4) + (tm * H * 4)
    vmem_limit = int(min(64 << 20, max(32 << 20, 2 * (weight_bytes + act_bytes))))

    cost = pl.CostEstimate(
        flops=4 * M * H * dff,                 # two matmuls: 2*M*H*dff each
        transcendentals=M,                      # one rsqrt per row
        bytes_accessed=2 * M * H * 4 + weight_bytes,
    )

    out = pl.pallas_call(
        kernel,
        out_shape=jax.ShapeDtypeStruct((M, H), jnp.float32),
        grid=grid,
        in_specs=[
            row_spec,                                   # x rows (pipelined)
            resident((H, dff)), resident((1, dff)),     # W1, b1 (resident)
            resident((dff, H)), resident((1, H)),       # W2, b2 (resident)
            resident((1, H)), resident((1, H)),         # gamma, beta
        ],
        out_specs=row_spec,
        compiler_params=pltpu.CompilerParams(
            dimension_semantics=("parallel",),
            vmem_limit_bytes=vmem_limit,
        ),
        cost_estimate=cost,
    )(x2, w1, b1, w2, b2, gamma, beta)

    return out.reshape(B, S, H)


def ffn_reference(x, params, ln_eps=1e-5):
    """Pure-JAX f32 reference mirroring the PyTorch forward."""
    h = jnp.maximum(x @ params["w1"] + params["b1"], 0.0)
    o = h @ params["w2"] + params["b2"]
    y = x + o
    mean = jnp.mean(y, axis=-1, keepdims=True)
    var = jnp.mean((y - mean) ** 2, axis=-1, keepdims=True)
    return (y - mean) * jax.lax.rsqrt(var + ln_eps) * params["gamma"] + params["beta"]


if __name__ == "__main__":
    B, S, H = 2, 10, 32          # matches the module docstring example
    dff = 4 * H

    key = jax.random.PRNGKey(0)
    keys = jax.random.split(key, 5)

    x = jax.random.normal(keys[0], (B, S, H), dtype=jnp.float32)

    # Deterministic init roughly matching nn.Linear's uniform(-1/sqrt(fan_in), ...).
    bound1 = 1.0 / jnp.sqrt(jnp.float32(H))
    bound2 = 1.0 / jnp.sqrt(jnp.float32(dff))
    w1 = jax.random.uniform(keys[1], (H, dff), jnp.float32, -bound1, bound1)
    b1 = jax.random.uniform(keys[2], (1, dff), jnp.float32, -bound1, bound1)
    w2 = jax.random.uniform(keys[3], (dff, H), jnp.float32, -bound2, bound2)
    b2 = jax.random.uniform(keys[4], (1, H), jnp.float32, -bound2, bound2)

    params = dict(
        w1=w1, b1=b1, w2=w2, b2=b2,
        gamma=jnp.ones((1, H), jnp.float32),
        beta=jnp.zeros((1, H), jnp.float32),
    )

    out = jax.block_until_ready(ffn_forward(x, params))
    assert out.shape == (B, S, H)

    ref = ffn_reference(x, params)
    # bf16 matmul operands (f32 accumulation) vs. full-f32 reference.
    assert jnp.allclose(out, ref, rtol=2e-2, atol=2e-2), "mismatch vs reference"

    print("KERNEL_OK")
</pallas_src>

<mosaic_0001>
module attributes {stable_mosaic.version = 11 : i64} {
  func.func @ffn_kernel(%arg0: i32, %arg1: memref<24x32xf32, #tpu.memory_space<vmem>>, %arg2: memref<32x128xbf16, #tpu.memory_space<vmem>>, %arg3: memref<1x128xf32, #tpu.memory_space<vmem>>, %arg4: memref<128x32xbf16, #tpu.memory_space<vmem>>, %arg5: memref<1x32xf32, #tpu.memory_space<vmem>>, %arg6: memref<1x32xf32, #tpu.memory_space<vmem>>, %arg7: memref<1x32xf32, #tpu.memory_space<vmem>>, %arg8: memref<24x32xf32, #tpu.memory_space<vmem>>) attributes {dimension_semantics = [#tpu.dimension_semantics<parallel>], iteration_bounds = array<i64: 1>, scalar_prefetch = 0 : i64, scratch_operands = 0 : i64, tpu.core_type = #tpu.core_type<tc>, window_params = [{transform_indices = @transform_0, window_bounds = array<i64: 24, 32>}, {pipeline_mode = #tpu.pipeline_mode<synchronous>, transform_indices = @transform_1, window_bounds = array<i64: 32, 128>}, {pipeline_mode = #tpu.pipeline_mode<synchronous>, transform_indices = @transform_2, window_bounds = array<i64: 1, 128>}, {pipeline_mode = #tpu.pipeline_mode<synchronous>, transform_indices = @transform_3, window_bounds = array<i64: 128, 32>}, {pipeline_mode = #tpu.pipeline_mode<synchronous>, transform_indices = @transform_4, window_bounds = array<i64: 1, 32>}, {pipeline_mode = #tpu.pipeline_mode<synchronous>, transform_indices = @transform_5, window_bounds = array<i64: 1, 32>}, {pipeline_mode = #tpu.pipeline_mode<synchronous>, transform_indices = @transform_6, window_bounds = array<i64: 1, 32>}, {transform_indices = @transform_7, window_bounds = array<i64: 24, 32>}]} {
    %c0 = arith.constant 0 : index
    %c0_0 = arith.constant 0 : index
    %0 = vector.load %arg1[%c0, %c0_0] : memref<24x32xf32, #tpu.memory_space<vmem>>, vector<24x32xf32>
    %1 = arith.truncf %0 : vector<24x32xf32> to vector<24x32xbf16>
    %c0_1 = arith.constant 0 : index
    %c0_2 = arith.constant 0 : index
    %2 = vector.load %arg2[%c0_1, %c0_2] : memref<32x128xbf16, #tpu.memory_space<vmem>>, vector<32x128xbf16>
    %cst = arith.constant dense<0.000000e+00> : vector<24x128xf32>
    %3 = tpu.matmul %1, %2, %cst {dimension_numbers = #tpu.dot_dimension_numbers<[1], [0], [0], [1], [0, 0, 1, 1], [], []>} : vector<24x32xbf16>, vector<32x128xbf16>, vector<24x128xf32> -> vector<24x128xf32>
    %c0_3 = arith.constant 0 : index
    %c0_4 = arith.constant 0 : index
    %4 = vector.load %arg3[%c0_3, %c0_4] : memref<1x128xf32, #tpu.memory_space<vmem>>, vector<1x128xf32>
    %5 = vector.broadcast %4 : vector<1x128xf32> to vector<24x128xf32>
    %6 = arith.addf %3, %5 : vector<24x128xf32>
    %cst_5 = arith.constant 0.000000e+00 : f32
    %7 = vector.broadcast %cst_5 : f32 to vector<24x128xf32>
    %8 = arith.maximumf %6, %7 : vector<24x128xf32>
    %9 = arith.truncf %8 : vector<24x128xf32> to vector<24x128xbf16>
    %c0_6 = arith.constant 0 : index
    %c0_7 = arith.constant 0 : index
    %10 = vector.load %arg4[%c0_6, %c0_7] : memref<128x32xbf16, #tpu.memory_space<vmem>>, vector<128x32xbf16>
    %cst_8 = arith.constant dense<0.000000e+00> : vector<24x32xf32>
    %11 = tpu.matmul %9, %10, %cst_8 {dimension_numbers = #tpu.dot_dimension_numbers<[1], [0], [0], [1], [0, 0, 1, 1], [], []>} : vector<24x128xbf16>, vector<128x32xbf16>, vector<24x32xf32> -> vector<24x32xf32>
    %c0_9 = arith.constant 0 : index
    %c0_10 = arith.constant 0 : index
    %12 = vector.load %arg5[%c0_9, %c0_10] : memref<1x32xf32, #tpu.memory_space<vmem>>, vector<1x32xf32>
    %13 = vector.broadcast %12 : vector<1x32xf32> to vector<24x32xf32>
    %14 = arith.addf %11, %13 : vector<24x32xf32>
    %15 = arith.addf %0, %14 : vector<24x32xf32>
    %cst_11 = arith.constant dense<0.000000e+00> : vector<24xf32>
    %16 = vector.multi_reduction <add>, %15, %cst_11 [1] : vector<24x32xf32> to vector<24xf32>
    %17 = vector.shape_cast %16 : vector<24xf32> to vector<24x1xf32>
    %cst_12 = arith.constant 3.200000e+01 : f32
    %18 = vector.broadcast %cst_12 : f32 to vector<24x1xf32>
    %19 = arith.divf %17, %18 : vector<24x1xf32>
    %20 = vector.broadcast %19 : vector<24x1xf32> to vector<24x32xf32>
    %21 = arith.subf %15, %20 : vector<24x32xf32>
    %22 = arith.mulf %21, %21 : vector<24x32xf32>
    %cst_13 = arith.constant dense<0.000000e+00> : vector<24xf32>
    %23 = vector.multi_reduction <add>, %22, %cst_13 [1] : vector<24x32xf32> to vector<24xf32>
    %24 = vector.shape_cast %23 : vector<24xf32> to vector<24x1xf32>
    %cst_14 = arith.constant 3.200000e+01 : f32
    %25 = vector.broadcast %cst_14 : f32 to vector<24x1xf32>
    %26 = arith.divf %24, %25 : vector<24x1xf32>
    %cst_15 = arith.constant 9.99999974E-6 : f32
    %27 = vector.broadcast %cst_15 : f32 to vector<24x1xf32>
    %28 = arith.addf %26, %27 : vector<24x1xf32>
    %29 = math.rsqrt %28 : vector<24x1xf32>
    %30 = vector.broadcast %29 : vector<24x1xf32> to vector<24x32xf32>
    %31 = arith.mulf %21, %30 : vector<24x32xf32>
    %c0_16 = arith.constant 0 : index
    %c0_17 = arith.constant 0 : index
    %32 = vector.load %arg6[%c0_16, %c0_17] : memref<1x32xf32, #tpu.memory_space<vmem>>, vector<1x32xf32>
    %33 = vector.broadcast %32 : vector<1x32xf32> to vector<24x32xf32>
    %34 = arith.mulf %31, %33 : vector<24x32xf32>
    %c0_18 = arith.constant 0 : index
    %c0_19 = arith.constant 0 : index
    %35 = vector.load %arg7[%c0_18, %c0_19] : memref<1x32xf32, #tpu.memory_space<vmem>>, vector<1x32xf32>
    %36 = vector.broadcast %35 : vector<1x32xf32> to vector<24x32xf32>
    %37 = arith.addf %34, %36 : vector<24x32xf32>
    %c0_20 = arith.constant 0 : index
    %c0_21 = arith.constant 0 : index
    %38 = vector.load %arg8[%c0_20, %c0_21] : memref<24x32xf32, #tpu.memory_space<vmem>>, vector<24x32xf32>
    tpu.vector_store %arg8[%c0_20, %c0_21], %37 {strides = array<i32>} : memref<24x32xf32, #tpu.memory_space<vmem>>, vector<24x32xf32>,
    return
  }
  func.func @transform_0(%arg0: i32) -> (i32, i32) {
    %c0_i32 = arith.constant 0 : i32
    %c0_i32_0 = arith.constant 0 : i32
    return %arg0, %c0_i32 : i32, i32
  }
  func.func @transform_1(%arg0: i32) -> (i32, i32) {
    %c0_i32 = arith.constant 0 : i32
    %c0_i32_0 = arith.constant 0 : i32
    %c0_i32_1 = arith.constant 0 : i32
    return %c0_i32, %c0_i32_0 : i32, i32
  }
  func.func @transform_2(%arg0: i32) -> (i32, i32) {
    %c0_i32 = arith.constant 0 : i32
    %c0_i32_0 = arith.constant 0 : i32
    %c0_i32_1 = arith.constant 0 : i32
    return %c0_i32, %c0_i32_0 : i32, i32
  }
  func.func @transform_3(%arg0: i32) -> (i32, i32) {
    %c0_i32 = arith.constant 0 : i32
    %c0_i32_0 = arith.constant 0 : i32
    %c0_i32_1 = arith.constant 0 : i32
    return %c0_i32, %c0_i32_0 : i32, i32
  }
  func.func @transform_4(%arg0: i32) -> (i32, i32) {
    %c0_i32 = arith.constant 0 : i32
    %c0_i32_0 = arith.constant 0 : i32
    %c0_i32_1 = arith.constant 0 : i32
    return %c0_i32, %c0_i32_0 : i32, i32
  }
  func.func @transform_5(%arg0: i32) -> (i32, i32) {
    %c0_i32 = arith.constant 0 : i32
    %c0_i32_0 = arith.constant 0 : i32
    %c0_i32_1 = arith.constant 0 : i32
    return %c0_i32, %c0_i32_0 : i32, i32
  }
  func.func @transform_6(%arg0: i32) -> (i32, i32) {
    %c0_i32 = arith.constant 0 : i32
    %c0_i32_0 = arith.constant 0 : i32
    %c0_i32_1 = arith.constant 0 : i32
    return %c0_i32, %c0_i32_0 : i32, i32
  }
  func.func @transform_7(%arg0: i32) -> (i32, i32) {
    %c0_i32 = arith.constant 0 : i32
    %c0_i32_0 = arith.constant 0 : i32
    return %arg0, %c0_i32 : i32, i32
  }
}

</mosaic_0001>

<bundles_post_ra>
// kernel: tpu_custom_call.1
= control target key start
LH: loop header
LB: loop body
LE: loop exit
PB: predicated region body
PF: predicated region fallthrough
CT: control target
= control target key end

     0   :  { %vm56_vm0 = vcmask 261120   ;;  %s539_s0 = inlined_call_operand.vmem [shape: f32[20,32], index: 0, kind: input, shape index: {}]   ;;  %s540_s1 = inlined_call_operand.vmem [shape: bf16[32,128], index: 1, kind: input, shape index: {}]   ;;  %s541_s2 = inlined_call_operand.vmem [shape: f32[1,128], index: 2, kind: input, shape index: {}]   ;;  %s542_s3 = inlined_call_operand.vmem [shape: bf16[128,32], index: 3, kind: input, shape index: {}]   ;;  %s543_s4 = inlined_call_operand.vmem [shape: f32[1,32], index: 4, kind: input, shape index: {}]   ;;  %s544_s5 = inlined_call_operand.vmem [shape: f32[1,32], index: 5, kind: input, shape index: {}]   ;;  %s545_s6 = inlined_call_operand.vmem [shape: f32[1,32], index: 6, kind: input, shape index: {}]   ;;  %s546_s7 = inlined_call_operand.hbm [shape: f32[20,32], index: 7, kind: output, shape index: {}]  }
   0x1   :  { %v378_v0 = vld [vmem:[%s540_s1] sm:$0xff]   ;;  %v379_v1 = vld [vmem:[%s540_s1 + $0x8] sm:$0xff]   ;;  %v30_v4 = vld [vmem:[%s539_s0 + $0x10] sm:$0xff] }
   0x2   :  { %347 = vmatprep.subr.bf16.mxu0 %v378_v0  ;;  %v28_v2 = vld [vmem:[%s539_s0] sm:$0xff]  ;;  %v473_v3 = vld [vmem:[%s539_s0 + $0x8] sm:$0xff]  ;;  %v32_v8 = vpack.c.bf16 %v30_v4, %v30_v4  ;;  %v382_v9 = vld [vmem:[%s542_s3 + $0x10] sm:$0xff]  }
   0x3   :  { %348 = vmatpush3.bf16.msra.mxu0 %v378_v0  ;;  %v31_v5 = vpack.c.bf16 %v473_v3, %v28_v2  ;;  %v380_v6 = vld [vmem:[%s542_s3] sm:$0xff]   ;;  %v381_v7 = vld [vmem:[%s542_s3 + $0x8] sm:$0xff]  }
   0x4   :  { %349 = vmatprep.subr.bf16.mxu0 %v379_v1  ;;  %355 = vmatprep.subr.bf16.mxu1 %v380_v6 }
   0x5   :  { %351 = vmatprep.mubr.msk.bf16.mxu0 %vm56_vm0, %v31_v5  ;;  %356 = vmatpush3.bf16.msra.mxu1 %v380_v6 }
   0x6   :  { %357 = vmatprep.subr.bf16.mxu1 %v381_v7 }
   0x7   :  { %350 = vmatpush3.bf16.msra.mxu0 %v379_v1 }
   0x9   :  { %358 = vmatpush3.bf16.msra.mxu1 %v381_v7 }
   0xa   :  { %352 = vmatmul.mubr.msk.bf16.vlgmr.msra.gmra.mrb[0].mxu0 %vm56_vm0, %v32_v8 }
   0xb   :  { %12 = vsyncpa [#allocation3], 0  ;;  %359 = vmatprep.subr.bf16.mxu1 %v382_v9  ;;  %v383_v10 = vld [vmem:[%s542_s3 + $0x18] sm:$0xff]   ;;  %v384_v11 = vld [vmem:[%s542_s3 + $0x20] sm:$0xff]   ;;  %s418_s30 = smov [#allocation2]  }
   0xc   :  { %v385_v12 = vld [vmem:[%s542_s3 + $0x28] sm:$0xff]   ;;  %v386_v13 = vld [vmem:[%s542_s3 + $0x30] sm:$0xff]   ;;  %v387_v14 = vld [vmem:[%s542_s3 + $0x38] sm:$0xff]   ;;  %s306_s8 = sshll.u32 %s418_s30, 4  ;;  %s307_s8 = int_to_ptr.vmem [resolvable:$true] %s306_s8 }
   0xd   :  { %360 = vmatpush3.bf16.msra.mxu1 %v382_v9  ;;  %v317_v15 = vld [vmem:[%s541_s2] ss:$0 sm:$0xff]  ;;  %p399_p1 = scmp.lt.s32.totalorder %s307_s8, %s307_s8 }
   0xe   :  { %361 = vmatprep.subr.bf16.mxu1 %v383_v10  ;;  %v322_v28 = vld [vmem:[%s543_s4] ss:$0 sm:$0xff] }
   0xf   :  { %v332_v5 = vld [vmem:[%s545_s6] ss:$0 sm:$0xff] }
  0x11   :  { %362 = vmatpush3.bf16.msra.mxu1 %v383_v10 }
  0x12   :  { %363 = vmatprep.subr.bf16.mxu1 %v384_v11 }
  0x15   :  { %364 = vmatpush3.bf16.msra.mxu1 %v384_v11 }
  0x16   :  { %365 = vmatprep.subr.bf16.mxu1 %v385_v12 }
  0x19   :  { %366 = vmatpush3.bf16.msra.mxu1 %v385_v12 }
  0x1a   :  { %367 = vmatprep.subr.bf16.mxu1 %v386_v13 }
  0x1d   :  { %368 = vmatpush3.bf16.msra.mxu1 %v386_v13 }
  0x1e   :  { %369 = vmatprep.subr.bf16.mxu1 %v387_v14 }
  0x21   :  { %370 = vmatpush3.bf16.msra.mxu1 %v387_v14 }
  0xdd   :  { %v353_v16 = vpop.f32.mrb[0].mxu0 }
  0xde   :  { %v106_v17 = vadd.f32 %v353_v16, %v317_v15  ;;  %v97_v18 = vpop.f32.mrb[1].mxu0 }
  0xdf   :  { %v98_v19 = vadd.f32 %v317_v15, %v97_v18  ;;  %v354_v20 = vpop.f32.mrb[2].mxu0 }
  0xe0   :  { %v100_v21 = vpop.f32.mrb[3].mxu0  ;;  %v113_v23 = vmax.f32 %v106_v17, 0.0 }
  0xe1   :  { %v101_v22 = vadd.f32 %v317_v15, %v100_v21  ;;  %v111_v24 = vmax.f32 %v98_v19, 0.0 }
  0xe2   :  { %v115_v27 = vpack.c.bf16 %v113_v23, %v113_v23 }
  0xe3   :  { %v112_v25 = vmax.f32 %v101_v22, 0.0 }
  0xe5   :  { %v114_v26 = vpack.c.bf16 %v112_v25, %v111_v24 }
  0xe7   :  { %371 = vmatprep.mubr.bf16.mxu1 %v114_v26 }
  0xe8   :  { %372 = vmatmul.mubr.bf16.vlgmr.msra.gmra.mrb[0].mxu1 %v115_v27 }
 0x1bb   :  { %v373_v29 = vpop.f32.mrb[0].mxu1 }
 0x1bc   :  { %v230_v30 = vadd.f32 %v373_v29, %v322_v28  ;;  %v221_v31 = vpop.f32.mrb[1].mxu1 }
 0x1bd   :  { %v222_v32 = vadd.f32 %v322_v28, %v221_v31  ;;  %v374_v33 = vpop.f32.mrb[2].mxu1 }
 0x1be   :  { %v224_v34 = vpop.f32.mrb[3].mxu1  ;;  %v237_v35 = vadd.f32 %v230_v30, %v30_v4 }
 0x1bf   :  { %v225_v36 = vadd.f32 %v322_v28, %v224_v34  ;;  %v235_v37 = vadd.f32 %v222_v32, %v28_v2 }
 0x1c0   :  { %v244_v38 = vsel %vm56_vm0, %v237_v35, 0.0 }
 0x1c1   :  { %245 = vadd.xlane.f32.xlu1 %v244_v38  ;;  %v238_v39 = vsel %vm56_vm0, %v235_v37, 0.0  ;;  %v236_v40 = vadd.f32 %v225_v36, %v473_v3  ;;  %v331_v3 = vld [vmem:[%s544_s5] ss:$0 sm:$0xff]  ;;  %s394_s5 = scalar_lea.vmem %s307_s8, 384 }
 0x1c2   :  { %239 = vadd.xlane.f32.xlu0 %v238_v39  ;;  %p395_p0 = scmp.ne.s32.totalorder %s307_s8, %s394_s5  ;;  %p400_p2 = scmp.lt.s32.totalorder %s394_s5, %s394_s5 }
 0x1c3   :  { %v241_v41 = vsel %vm56_vm0, %v236_v40, 0.0 }
 0x1c4   :  { %p401_p3 = por %p400_p2, %p399_p1 }
 0x1c6   :  { %242 = vadd.xlane.f32.xlu0 %v241_v41  ;;  %p402_p4 = pnand %p401_p3, %p395_p0 }
 0x24e   :  { %v246_v42 = vpop.xlane.xlu1 %245 }
 0x24f   :  { %v250_v43 = vmul.f32 0.03125, %v246_v42  ;;  %v240_v44 = vpop.xlane.xlu0 %239 }
 0x250   :  { %v248_v45 = vmul.f32 0.03125, %v240_v44 }
 0x251   :  { %v253_v46 = vsub.f32 %v237_v35, %v250_v43 }
 0x252   :  { %v251_v47 = vsub.f32 %v235_v37, %v248_v45 }
 0x253   :  { %v243_v48 = vpop.xlane.xlu0 %242  ;;  %v256_v53 = vmul.f32 %v253_v46, %v253_v46 }
 0x254   :  { %v249_v49 = vmul.f32 0.03125, %v243_v48  ;;  %v254_v50 = vmul.f32 %v251_v47, %v251_v47 }
 0x255   :  { %v263_v55 = vsel %vm56_vm0, %v256_v53, 0.0 }
 0x256   :  { %v252_v51 = vsub.f32 %v236_v40, %v249_v49  ;;  %v257_v52 = vsel %vm56_vm0, %v254_v50, 0.0 }
 0x257   :  { %258 = vadd.xlane.f32.xlu1 %v257_v52 }
 0x258   :  { %v255_v54 = vmul.f32 %v252_v51, %v252_v51 }
 0x25a   :  { %v260_v56 = vsel %vm56_vm0, %v255_v54, 0.0 }
 0x25b   :  { %264 = vadd.xlane.f32.xlu1 %v263_v55  ;;  %261 = vadd.xlane.f32.xlu0 %v260_v56 }
 0x2e4   :  { %v259_v57 = vpop.xlane.xlu1 %258 }
 0x2e5   :  { %v266_v58 = vmul.f32 0.03125, %v259_v57 }
 0x2e7   :  { %v269_v59 = vadd.f32 1e-05, %v266_v58 }
 0x2e8   :  { %v265_v60 = vpop.xlane.xlu1 %264  ;;  %v262_v61 = vpop.xlane.xlu0 %261 }
 0x2e9   :  { %388 = vrsqrt.f32 %v269_v59  ;;  %v268_v62 = vmul.f32 0.03125, %v265_v60  ;;  %v267_v63 = vmul.f32 0.03125, %v262_v61 }
 0x2eb   :  { %v271_v0 = vadd.f32 1e-05, %v268_v62  ;;  %v270_v1 = vadd.f32 1e-05, %v267_v63 }
 0x2ed   :  { %390 = vrsqrt.f32 %v271_v0 }
 0x2ee   :  { %392 = vrsqrt.f32 %v270_v1 }
 0x2f3   :  { %v389_v2 = vpop.eup %388 }
 0x2f4   :  { %v275_v4 = vmul.f32 %v389_v2, %v251_v47 }
 0x2f6   :  { %v285_v6 = vmul.f32 %v331_v3, %v275_v4 }
 0x2f7   :  { %v391_v7 = vpop.eup %390 }
 0x2f8   :  { %v393_v8 = vpop.eup %392  ;;  %v277_v9 = vmul.f32 %v391_v7, %v253_v46  ;;  %v295_v10 = vadd.f32 %v332_v5, %v285_v6 }
 0x2f9   :  { %v276_v11 = vmul.f32 %v393_v8, %v252_v51 }
 0x2fa   :  { %v287_v12 = vmul.f32 %v331_v3, %v277_v9  ;;  %298 = vst.msk [vmem:[#allocation2] sm:$0xff] %vm56_vm0, %v295_v10 }
 0x2fb   :  { %v286_v13 = vmul.f32 %v331_v3, %v276_v11 }
 0x2fc   :  { %v297_v14 = vadd.f32 %v332_v5, %v287_v12 }
 0x2fd   :  { %v296_v15 = vadd.f32 %v332_v5, %v286_v13 }
 0x2fe   :  { %300 = vst.msk [vmem:[#allocation2 + $0x10] sm:$0xff] %vm56_vm0, %v297_v14 }
 0x2ff   :  { %299 = vst.msk [vmem:[#allocation2 + $0x8] sm:$0xff] %vm56_vm0, %v296_v15 }
 0x300   :  { %405 = shalt.err (!%p402_p4)
}
 0x301   :  { %s406_s10 = scalar_lea.hbm %s546_s7, 384 }
 0x302   :  { %p407_p5 = scmp.ne.s32.totalorder %s546_s7, %s406_s10  ;;  %p410_p6 = scmp.lt.u32.totalorder %s406_s10, %s546_s7 }
 0x304   :  { %p412_p7 = pnand %p410_p6, %p407_p5 }
 0x306   :  { %415 = shalt.err (!%p412_p7)
}
 0x307   :  { %s419_s0 = smov 128   ;;  %s420_s14 = smov 8  }
 0x308   :  { %312 = dma.vmem_to_hbm [thread:$0]  %s307_s8, 384, %s546_s7, [#allocation3], %s419_s0, %s419_s0, %s420_s14  }
 0x309   :  { %416 = dma.done.wait [#allocation3], 384  }
 0x30a   :  { %417 = vsyncadd [#allocation3], 4294966912 }
 0x30b   :  { %316 = vsyncpa [#allocation3], 1 }

</bundles_post_ra>
